<compile_context>
chip_gen: v5e
topology: v5e:2x2
jax: 0.10.0
libtpu: 0.0.40
codegen_flags: <defaults>
</compile_context>

<pallas_src>
import math
import numpy as np
import jax
import jax.numpy as jnp
from jax.experimental import pallas as pl
from jax.experimental.pallas import tpu as pltpu

EPS = 1e-5                       # PyTorch GroupNorm default eps
_INV_SQRT2 = 1.0 / math.sqrt(2.0)


def _round_up(v, m):
    return ((v + m - 1) // m) * m


def _pick_tile(L, cap):
    """Largest multiple-of-8 divisor of L that is <= cap (whole L if none)."""
    if L <= cap:
        return L
    t = (cap // 8) * 8
    while t >= 8:
        if L % t == 0:
            return t
        t -= 8
    return L


def _make_kernel(K, left, right, TL, count, single_pass):
    """Build the kernel body (closure over static sizes)."""
    has_pre = left > 0
    has_post = right > 0
    inv_count = 1.0 / float(count)   # count = L * C (real, unpadded) elements

    def kernel(*refs):
        i = 0
        x_ref = refs[i]; i += 1
        pre_ref = refs[i] if has_pre else None
        i += int(has_pre)
        post_ref = refs[i] if has_post else None
        i += int(has_post)
        (wdw_ref, gamma_ref, beta_ref, w1_ref, w2_ref,
         o_ref, xpad_ref, sum_ref, ssq_ref) = refs[i:]

        p = pl.program_id(1)          # phase: 0 = stats, 1 = apply
        t = pl.program_id(2)          # L-tile index (unused directly)
        del t

        # ---- assemble the zero-padded ('same') tile in VMEM: (left+TL+right, Cp)
        if has_pre:
            xpad_ref[0:left, :] = pre_ref[0, 0]
        xpad_ref[left:left + TL, :] = x_ref[0]
        if has_post:
            xpad_ref[left + TL:left + TL + right, :] = post_ref[0, 0]

        # ---- depthwise 'same' conv (cross-correlation), f32 on the VPU ---------
        dw = xpad_ref[0:TL, :] * wdw_ref[0:1, :]
        for k in range(1, K):                      # K is small & static -> unrolled
            dw = dw + xpad_ref[k:k + TL, :] * wdw_ref[k:k + 1, :]

        def apply(mu, var):
            # GroupNorm(num_groups=1) affine + bf16 MXU 1x1 convs + GELU + residual
            rsig = jax.lax.rsqrt(var + EPS)
            xn = (dw - mu) * rsig * gamma_ref[...] + beta_ref[...]
            h = jnp.dot(xn.astype(jnp.bfloat16), w1_ref[...],
                        preferred_element_type=jnp.float32)
            h = 0.5 * h * (1.0 + jax.lax.erf(h * _INV_SQRT2))   # exact (erf) GELU
            y = jnp.dot(h.astype(jnp.bfloat16), w2_ref[...],
                        preferred_element_type=jnp.float32)
            o_ref[0] = x_ref[0] + y

        if single_pass:
            # whole sample in one tile: fused single-pass sum / sum-of-squares
            m1 = jnp.sum(dw) * inv_count
            m2 = jnp.sum(dw * dw) * inv_count
            apply(m1, m2 - m1 * m1)
        else:
            @pl.when(jnp.logical_and(p == 0, pl.program_id(2) == 0))
            def _init():
                sum_ref[...] = jnp.zeros_like(sum_ref)
                ssq_ref[...] = jnp.zeros_like(ssq_ref)

            @pl.when(p == 0)
            def _accumulate():
                sum_ref[...] = sum_ref[...] + jnp.sum(dw, keepdims=True)
                ssq_ref[...] = ssq_ref[...] + jnp.sum(dw * dw, keepdims=True)

            @pl.when(p == 1)
            def _apply():
                mu = sum_ref[...] * inv_count            # (1, 1), broadcasts
                var = ssq_ref[...] * inv_count - mu * mu
                apply(mu, var)

    return kernel


def convnext_bottleneck(x_ncl, w_dw, gamma, beta, w1, w2, *, tile_len=512):
    """ConvNeXtBottleneck forward (stride=1, downsample=None).

    x_ncl : (N, C, L) f32 (PyTorch NCL); w_dw (C,1,K); gamma/beta (C,);
    w1 (4C, C, 1); w2 (C, 4C, 1).
    """
    N, C, L = x_ncl.shape
    K = w_dw.shape[-1]
    H = w1.shape[0]

    total_pad = K - 1                       # PyTorch 'same' (stride=1, dilation=1)
    left = total_pad // 2
    right = total_pad - left

    Cp = _round_up(C, 128)                  # lane-dense channel padding
    Hp = _round_up(H, 128)

    TL = _pick_tile(L, tile_len)
    if TL != L and TL < total_pad:          # halo must fit in one neighbor tile
        TL = L
    T = L // TL
    single_pass = (T == 1)

    # ---- NCL -> NLC glue (+ zero-pad channels); fuses with the transpose copy ---
    f32 = jnp.float32
    x_nlc = jnp.transpose(x_ncl, (0, 2, 1)).astype(f32)              # (N, L, C)
    if Cp != C:
        x_nlc = jnp.pad(x_nlc, ((0, 0), (0, 0), (0, Cp - C)))        # (N, L, Cp)

    args = [x_nlc]
    in_specs = [pl.BlockSpec((1, TL, Cp), lambda n, p, t: (n, t, 0))]

    # tiny per-tile halo slabs ((K-1) rows/tile) instead of a full padded HBM copy
    xr = x_nlc.reshape(N, T, TL, Cp)
    if left > 0:
        pre = jnp.concatenate(
            [jnp.zeros((N, 1, left, Cp), f32), xr[:, :-1, TL - left:, :]], axis=1)
        args.append(pre)
        in_specs.append(pl.BlockSpec((1, 1, left, Cp),
                                     lambda n, p, t: (n, t, 0, 0)))
    if right > 0:
        post = jnp.concatenate(
            [xr[:, 1:, :right, :], jnp.zeros((N, 1, right, Cp), f32)], axis=1)
        args.append(post)
        in_specs.append(pl.BlockSpec((1, 1, right, Cp),
                                     lambda n, p, t: (n, t, 0, 0)))

    # ---- weights: pad to lane-dense shapes; matmul operands in bf16 -------------
    wdw_kc = jnp.pad(jnp.transpose(w_dw[:, 0, :], (1, 0)).astype(f32),
                     ((0, 0), (0, Cp - C)))                           # (K, Cp)
    gamma2 = jnp.pad(gamma.astype(f32), (0, Cp - C)).reshape(1, Cp)
    beta2 = jnp.pad(beta.astype(f32), (0, Cp - C)).reshape(1, Cp)
    w1_t = jnp.pad(jnp.transpose(w1[:, :, 0], (1, 0)).astype(f32),
                   ((0, Cp - C), (0, Hp - H))).astype(jnp.bfloat16)   # (Cp, Hp)
    w2_t = jnp.pad(jnp.transpose(w2[:, :, 0], (1, 0)).astype(f32),
                   ((0, Hp - H), (0, Cp - C))).astype(jnp.bfloat16)   # (Hp, Cp)

    args += [wdw_kc, gamma2, beta2, w1_t, w2_t]
    in_specs += [
        # constant across the grid -> single-buffered to save VMEM
        pl.BlockSpec((K, Cp), lambda n, p, t: (0, 0), pipeline_mode=pl.Buffered(1)),
        pl.BlockSpec((1, Cp), lambda n, p, t: (0, 0), pipeline_mode=pl.Buffered(1)),
        pl.BlockSpec((1, Cp), lambda n, p, t: (0, 0), pipeline_mode=pl.Buffered(1)),
        pl.BlockSpec((Cp, Hp), lambda n, p, t: (0, 0), pipeline_mode=pl.Buffered(1)),
        pl.BlockSpec((Hp, Cp), lambda n, p, t: (0, 0), pipeline_mode=pl.Buffered(1)),
    ]

    # phase 0 keeps revisiting output block 0 (never written there); phase 1 writes
    # tile t.  Using p*t keeps each output block's grid visits consecutive.
    out_spec = pl.BlockSpec((1, TL, Cp), lambda n, p, t: (n, p * t, 0))

    grid = (N, 1, 1) if single_pass else (N, 2, T)
    kernel = _make_kernel(K, left, right, TL, L * C, single_pass)

    out_nlc = pl.pallas_call(
        kernel,
        out_shape=jax.ShapeDtypeStruct((N, L, Cp), f32),
        grid_spec=pltpu.PrefetchScalarGridSpec(
            num_scalar_prefetch=0,
            grid=grid,
            in_specs=in_specs,
            out_specs=out_spec,
            scratch_shapes=[
                pltpu.VMEM((TL + K - 1, Cp), f32),   # 'same'-padded input tile
                pltpu.VMEM((1, 1), f32),             # running sum
                pltpu.VMEM((1, 1), f32),             # running sum of squares
            ]),
        compiler_params=pltpu.CompilerParams(
            dimension_semantics=("parallel", "arbitrary", "arbitrary"),
            vmem_limit_bytes=64 * 1024 * 1024),
    )(*args)

    return jnp.transpose(out_nlc[:, :, :C], (0, 2, 1))                # back to NCL


def _reference(x, w_dw, gamma, beta, w1, w2):
    """Plain-JAX reference matching PyTorch semantics (NCL layout, f32, erf GELU)."""
    N, C, L = x.shape
    K = w_dw.shape[-1]
    left = (K - 1) // 2
    xp = jnp.pad(x, ((0, 0), (0, 0), (left, (K - 1) - left)))
    dw = jnp.zeros((N, C, L), jnp.float32)
    for k in range(K):
        dw = dw + xp[:, :, k:k + L] * w_dw[:, 0, k][None, :, None]
    mu = dw.mean(axis=(1, 2), keepdims=True)
    var = ((dw - mu) ** 2).mean(axis=(1, 2), keepdims=True)
    xn = (dw - mu) / jnp.sqrt(var + EPS)
    xn = xn * gamma[None, :, None] + beta[None, :, None]
    h = jnp.einsum('oc,ncl->nol', w1[:, :, 0], xn)
    h = 0.5 * h * (1.0 + jax.lax.erf(h / jnp.sqrt(2.0)))
    y = jnp.einsum('oc,ncl->nol', w2[:, :, 0], h)
    return x + y


if __name__ == "__main__":
    # Small shapes consistent with the module (stride=1, downsample=None).
    N, C, L, K = 2, 4, 64, 5      # batch, channels, sequence length, kernel size
    H = 4 * C                     # expanded hidden width of the bottleneck

    key = jax.random.PRNGKey(0)
    kx, k1, k2, k3, k4, k5 = jax.random.split(key, 6)

    x = jax.random.normal(kx, (N, C, L), jnp.float32)               # NCL input
    w_dw = 0.3 * jax.random.normal(k1, (C, 1, K), jnp.float32)      # depthwise conv
    gamma = 1.0 + 0.1 * jax.random.normal(k2, (C,), jnp.float32)    # GroupNorm weight
    beta = 0.1 * jax.random.normal(k3, (C,), jnp.float32)           # GroupNorm bias
    w1 = 0.2 * jax.random.normal(k4, (H, C, 1), jnp.float32)        # 1x1 conv C->4C
    w2 = 0.2 * jax.random.normal(k5, (C, H, 1), jnp.float32)        # 1x1 conv 4C->C

    ref = _reference(x, w_dw, gamma, beta, w1, w2)

    # tiled two-pass GroupNorm path (L split into 4 tiles of 16, exercises halos)
    out_tiled = jax.block_until_ready(
        convnext_bottleneck(x, w_dw, gamma, beta, w1, w2, tile_len=16))
    np.testing.assert_allclose(np.asarray(out_tiled), np.asarray(ref),
                               rtol=2e-2, atol=2e-2)

    # single-pass path (whole sample per grid step, x read once)
    out_single = jax.block_until_ready(
        convnext_bottleneck(x, w_dw, gamma, beta, w1, w2))
    np.testing.assert_allclose(np.asarray(out_single), np.asarray(ref),
                               rtol=2e-2, atol=2e-2)

    print("KERNEL_OK")
</pallas_src>

<mosaic_0001>
module attributes {stable_mosaic.version = 11 : i64} {
  func.func @kernel(%arg0: i32, %arg1: i32, %arg2: i32, %arg3: memref<1x16x128xf32, #tpu.memory_space<vmem>>, %arg4: memref<1x1x2x128xf32, #tpu.memory_space<vmem>>, %arg5: memref<1x1x2x128xf32, #tpu.memory_space<vmem>>, %arg6: memref<5x128xf32, #tpu.memory_space<vmem>>, %arg7: memref<1x128xf32, #tpu.memory_space<vmem>>, %arg8: memref<1x128xf32, #tpu.memory_space<vmem>>, %arg9: memref<128x128xbf16, #tpu.memory_space<vmem>>, %arg10: memref<128x128xbf16, #tpu.memory_space<vmem>>, %arg11: memref<1x16x128xf32, #tpu.memory_space<vmem>>, %arg12: memref<20x128xf32, #tpu.memory_space<vmem>>, %arg13: memref<1x1xf32, #tpu.memory_space<vmem>>, %arg14: memref<1x1xf32, #tpu.memory_space<vmem>>) attributes {dimension_semantics = [#tpu.dimension_semantics<parallel>, #tpu.dimension_semantics<arbitrary>, #tpu.dimension_semantics<arbitrary>], iteration_bounds = array<i64: 2, 2, 4>, scalar_prefetch = 0 : i64, scratch_operands = 3 : i64, tpu.core_type = #tpu.core_type<tc>, window_params = [{transform_indices = @transform_0, window_bounds = array<i64: 1, 16, 128>}, {transform_indices = @transform_1, window_bounds = array<i64: 1, 1, 2, 128>}, {transform_indices = @transform_2, window_bounds = array<i64: 1, 1, 2, 128>}, {pipeline_mode = #tpu.pipeline_mode<synchronous>, transform_indices = @transform_3, window_bounds = array<i64: 5, 128>}, {pipeline_mode = #tpu.pipeline_mode<synchronous>, transform_indices = @transform_4, window_bounds = array<i64: 1, 128>}, {pipeline_mode = #tpu.pipeline_mode<synchronous>, transform_indices = @transform_5, window_bounds = array<i64: 1, 128>}, {pipeline_mode = #tpu.pipeline_mode<synchronous>, transform_indices = @transform_6, window_bounds = array<i64: 128, 128>}, {pipeline_mode = #tpu.pipeline_mode<synchronous>, transform_indices = @transform_7, window_bounds = array<i64: 128, 128>}, {transform_indices = @transform_8, window_bounds = array<i64: 1, 16, 128>}]} {
    %c0 = arith.constant 0 : index
    %c0_0 = arith.constant 0 : index
    %c0_1 = arith.constant 0 : index
    %c0_2 = arith.constant 0 : index
    %0 = vector.load %arg4[%c0, %c0_0, %c0_1, %c0_2] : memref<1x1x2x128xf32, #tpu.memory_space<vmem>>, vector<1x1x2x128xf32>
    %1 = vector.shape_cast %0 : vector<1x1x2x128xf32> to vector<2x128xf32>
    %c0_3 = arith.constant 0 : index
    %c0_4 = arith.constant 0 : index
    %2 = vector.load %arg12[%c0_3, %c0_4] : memref<20x128xf32, #tpu.memory_space<vmem>>, vector<2x128xf32>
    tpu.vector_store %arg12[%c0_3, %c0_4], %1 {strides = array<i32>} : memref<20x128xf32, #tpu.memory_space<vmem>>, vector<2x128xf32>,
    %c0_5 = arith.constant 0 : index
    %c0_6 = arith.constant 0 : index
    %c0_7 = arith.constant 0 : index
    %3 = vector.load %arg3[%c0_5, %c0_6, %c0_7] : memref<1x16x128xf32, #tpu.memory_space<vmem>>, vector<1x16x128xf32>
    %4 = vector.shape_cast %3 : vector<1x16x128xf32> to vector<16x128xf32>
    %c2 = arith.constant 2 : index
    %c0_8 = arith.constant 0 : index
    %5 = vector.load %arg12[%c2, %c0_8] : memref<20x128xf32, #tpu.memory_space<vmem>>, vector<16x128xf32>
    tpu.vector_store %arg12[%c2, %c0_8], %4 {strides = array<i32>} : memref<20x128xf32, #tpu.memory_space<vmem>>, vector<16x128xf32>,
    %c0_9 = arith.constant 0 : index
    %c0_10 = arith.constant 0 : index
    %c0_11 = arith.constant 0 : index
    %c0_12 = arith.constant 0 : index
    %6 = vector.load %arg5[%c0_9, %c0_10, %c0_11, %c0_12] : memref<1x1x2x128xf32, #tpu.memory_space<vmem>>, vector<1x1x2x128xf32>
    %7 = vector.shape_cast %6 : vector<1x1x2x128xf32> to vector<2x128xf32>
    %c18 = arith.constant 18 : index
    %c0_13 = arith.constant 0 : index
    %8 = vector.load %arg12[%c18, %c0_13] : memref<20x128xf32, #tpu.memory_space<vmem>>, vector<2x128xf32>
    tpu.vector_store %arg12[%c18, %c0_13], %7 {strides = array<i32>} : memref<20x128xf32, #tpu.memory_space<vmem>>, vector<2x128xf32>,
    %c0_14 = arith.constant 0 : index
    %c0_15 = arith.constant 0 : index
    %9 = vector.load %arg12[%c0_14, %c0_15] : memref<20x128xf32, #tpu.memory_space<vmem>>, vector<16x128xf32>
    %c0_16 = arith.constant 0 : index
    %c0_17 = arith.constant 0 : index
    %10 = vector.load %arg6[%c0_16, %c0_17] : memref<5x128xf32, #tpu.memory_space<vmem>>, vector<1x128xf32>
    %11 = vector.broadcast %10 : vector<1x128xf32> to vector<16x128xf32>
    %12 = arith.mulf %9, %11 : vector<16x128xf32>
    %c1 = arith.constant 1 : index
    %c0_18 = arith.constant 0 : index
    %13 = vector.load %arg12[%c1, %c0_18] : memref<20x128xf32, #tpu.memory_space<vmem>>, vector<16x128xf32>
    %c1_19 = arith.constant 1 : index
    %c0_20 = arith.constant 0 : index
    %14 = vector.load %arg6[%c1_19, %c0_20] : memref<5x128xf32, #tpu.memory_space<vmem>>, vector<1x128xf32>
    %15 = vector.broadcast %14 : vector<1x128xf32> to vector<16x128xf32>
    %16 = arith.mulf %13, %15 : vector<16x128xf32>
    %17 = arith.addf %12, %16 : vector<16x128xf32>
    %c2_21 = arith.constant 2 : index
    %c0_22 = arith.constant 0 : index
    %18 = vector.load %arg12[%c2_21, %c0_22] : memref<20x128xf32, #tpu.memory_space<vmem>>, vector<16x128xf32>
    %c2_23 = arith.constant 2 : index
    %c0_24 = arith.constant 0 : index
    %19 = vector.load %arg6[%c2_23, %c0_24] : memref<5x128xf32, #tpu.memory_space<vmem>>, vector<1x128xf32>
    %20 = vector.broadcast %19 : vector<1x128xf32> to vector<16x128xf32>
    %21 = arith.mulf %18, %20 : vector<16x128xf32>
    %22 = arith.addf %17, %21 : vector<16x128xf32>
    %c3 = arith.constant 3 : index
    %c0_25 = arith.constant 0 : index
    %23 = vector.load %arg12[%c3, %c0_25] : memref<20x128xf32, #tpu.memory_space<vmem>>, vector<16x128xf32>
    %c3_26 = arith.constant 3 : index
    %c0_27 = arith.constant 0 : index
    %24 = vector.load %arg6[%c3_26, %c0_27] : memref<5x128xf32, #tpu.memory_space<vmem>>, vector<1x128xf32>
    %25 = vector.broadcast %24 : vector<1x128xf32> to vector<16x128xf32>
    %26 = arith.mulf %23, %25 : vector<16x128xf32>
    %27 = arith.addf %22, %26 : vector<16x128xf32>
    %c4 = arith.constant 4 : index
    %c0_28 = arith.constant 0 : index
    %28 = vector.load %arg12[%c4, %c0_28] : memref<20x128xf32, #tpu.memory_space<vmem>>, vector<16x128xf32>
    %c4_29 = arith.constant 4 : index
    %c0_30 = arith.constant 0 : index
    %29 = vector.load %arg6[%c4_29, %c0_30] : memref<5x128xf32, #tpu.memory_space<vmem>>, vector<1x128xf32>
    %30 = vector.broadcast %29 : vector<1x128xf32> to vector<16x128xf32>
    %31 = arith.mulf %28, %30 : vector<16x128xf32>
    %32 = arith.addf %27, %31 : vector<16x128xf32>
    %c0_i32 = arith.constant 0 : i32
    %33 = arith.cmpi eq, %arg1, %c0_i32 : i32
    %c0_i32_31 = arith.constant 0 : i32
    %34 = arith.cmpi eq, %arg2, %c0_i32_31 : i32
    %35 = arith.andi %33, %34 : i1
    %36 = arith.extui %35 : i1 to i32
    %c0_i32_32 = arith.constant 0 : i32
    %37 = arith.cmpi ne, %36, %c0_i32_32 : i32
    scf.if %37 {
      %cst = arith.constant 0.000000e+00 : f32
      %44 = vector.broadcast %cst : f32 to vector<1x1xf32>
      %c0_36 = arith.constant 0 : index
      %c0_37 = arith.constant 0 : index
      %45 = vector.load %arg13[%c0_36, %c0_37] : memref<1x1xf32, #tpu.memory_space<vmem>>, vector<1x1xf32>
      tpu.vector_store %arg13[%c0_36, %c0_37], %44 {strides = array<i32>} : memref<1x1xf32, #tpu.memory_space<vmem>>, vector<1x1xf32>,
      %cst_38 = arith.constant 0.000000e+00 : f32
      %46 = vector.broadcast %cst_38 : f32 to vector<1x1xf32>
      %c0_39 = arith.constant 0 : index
      %c0_40 = arith.constant 0 : index
      %47 = vector.load %arg14[%c0_39, %c0_40] : memref<1x1xf32, #tpu.memory_space<vmem>>, vector<1x1xf32>
      tpu.vector_store %arg14[%c0_39, %c0_40], %46 {strides = array<i32>} : memref<1x1xf32, #tpu.memory_space<vmem>>, vector<1x1xf32>,
    } else {
    }
    %c0_i32_33 = arith.constant 0 : i32
    %38 = arith.cmpi eq, %arg1, %c0_i32_33 : i32
    %39 = arith.extui %38 : i1 to i32
    %c0_i32_34 = arith.constant 0 : i32
    %40 = arith.cmpi ne, %39, %c0_i32_34 : i32
    scf.if %40 {
      %c0_36 = arith.constant 0 : index
      %c0_37 = arith.constant 0 : index
      %44 = vector.load %arg13[%c0_36, %c0_37] : memref<1x1xf32, #tpu.memory_space<vmem>>, vector<1x1xf32>
      %45 = vector.shape_cast %32 : vector<16x128xf32> to vector<1x16x128xf32>
      %cst = arith.constant dense<0.000000e+00> : vector<1xf32>
      %46 = vector.multi_reduction <add>, %45, %cst [1, 2] : vector<1x16x128xf32> to vector<1xf32>
      %47 = vector.shape_cast %46 : vector<1xf32> to vector<1x1x1xf32>
      %48 = vector.extract %47[0, 0, 0] : f32 from vector<1x1x1xf32>
      %49 = vector.broadcast %48 : f32 to vector<1x1xf32>
      %50 = arith.addf %44, %49 : vector<1x1xf32>
      %c0_38 = arith.constant 0 : index
      %c0_39 = arith.constant 0 : index
      %51 = vector.load %arg13[%c0_38, %c0_39] : memref<1x1xf32, #tpu.memory_space<vmem>>, vector<1x1xf32>
      tpu.vector_store %arg13[%c0_38, %c0_39], %50 {strides = array<i32>} : memref<1x1xf32, #tpu.memory_space<vmem>>, vector<1x1xf32>,
      %c0_40 = arith.constant 0 : index
      %c0_41 = arith.constant 0 : index
      %52 = vector.load %arg14[%c0_40, %c0_41] : memref<1x1xf32, #tpu.memory_space<vmem>>, vector<1x1xf32>
      %53 = arith.mulf %32, %32 : vector<16x128xf32>
      %54 = vector.shape_cast %53 : vector<16x128xf32> to vector<1x16x128xf32>
      %cst_42 = arith.constant dense<0.000000e+00> : vector<1xf32>
      %55 = vector.multi_reduction <add>, %54, %cst_42 [1, 2] : vector<1x16x128xf32> to vector<1xf32>
      %56 = vector.shape_cast %55 : vector<1xf32> to vector<1x1x1xf32>
      %57 = vector.extract %56[0, 0, 0] : f32 from vector<1x1x1xf32>
      %58 = vector.broadcast %57 : f32 to vector<1x1xf32>
      %59 = arith.addf %52, %58 : vector<1x1xf32>
      %c0_43 = arith.constant 0 : index
      %c0_44 = arith.constant 0 : index
      %60 = vector.load %arg14[%c0_43, %c0_44] : memref<1x1xf32, #tpu.memory_space<vmem>>, vector<1x1xf32>
      tpu.vector_store %arg14[%c0_43, %c0_44], %59 {strides = array<i32>} : memref<1x1xf32, #tpu.memory_space<vmem>>, vector<1x1xf32>,
    } else {
    }
    %c1_i32 = arith.constant 1 : i32
    %41 = arith.cmpi eq, %arg1, %c1_i32 : i32
    %42 = arith.extui %41 : i1 to i32
    %c0_i32_35 = arith.constant 0 : i32
    %43 = arith.cmpi ne, %42, %c0_i32_35 : i32
    scf.if %43 {
      %c0_36 = arith.constant 0 : index
      %c0_37 = arith.constant 0 : index
      %44 = vector.load %arg13[%c0_36, %c0_37] : memref<1x1xf32, #tpu.memory_space<vmem>>, vector<1x1xf32>
      %cst = arith.constant 3.906250e-03 : f32
      %45 = vector.broadcast %cst : f32 to vector<1x1xf32>
      %46 = arith.mulf %44, %45 : vector<1x1xf32>
      %c0_38 = arith.constant 0 : index
      %c0_39 = arith.constant 0 : index
      %47 = vector.load %arg14[%c0_38, %c0_39] : memref<1x1xf32, #tpu.memory_space<vmem>>, vector<1x1xf32>
      %cst_40 = arith.constant 3.906250e-03 : f32
      %48 = vector.broadcast %cst_40 : f32 to vector<1x1xf32>
      %49 = arith.mulf %47, %48 : vector<1x1xf32>
      %50 = arith.mulf %46, %46 : vector<1x1xf32>
      %51 = arith.subf %49, %50 : vector<1x1xf32>
      %cst_41 = arith.constant 9.99999974E-6 : f32
      %52 = vector.broadcast %cst_41 : f32 to vector<1x1xf32>
      %53 = arith.addf %51, %52 : vector<1x1xf32>
      %54 = math.rsqrt %53 : vector<1x1xf32>
      %55 = vector.broadcast %46 : vector<1x1xf32> to vector<16x128xf32>
      %56 = arith.subf %32, %55 : vector<16x128xf32>
      %57 = vector.broadcast %54 : vector<1x1xf32> to vector<16x128xf32>
      %58 = arith.mulf %56, %57 : vector<16x128xf32>
      %c0_42 = arith.constant 0 : index
      %c0_43 = arith.constant 0 : index
      %59 = vector.load %arg7[%c0_42, %c0_43] : memref<1x128xf32, #tpu.memory_space<vmem>>, vector<1x128xf32>
      %60 = vector.broadcast %59 : vector<1x128xf32> to vector<16x128xf32>
      %61 = arith.mulf %58, %60 : vector<16x128xf32>
      %c0_44 = arith.constant 0 : index
      %c0_45 = arith.constant 0 : index
      %62 = vector.load %arg8[%c0_44, %c0_45] : memref<1x128xf32, #tpu.memory_space<vmem>>, vector<1x128xf32>
      %63 = vector.broadcast %62 : vector<1x128xf32> to vector<16x128xf32>
      %64 = arith.addf %61, %63 : vector<16x128xf32>
      %65 = arith.truncf %64 : vector<16x128xf32> to vector<16x128xbf16>
      %c0_46 = arith.constant 0 : index
      %c0_47 = arith.constant 0 : index
      %66 = vector.load %arg9[%c0_46, %c0_47] : memref<128x128xbf16, #tpu.memory_space<vmem>>, vector<128x128xbf16>
      %cst_48 = arith.constant dense<0.000000e+00> : vector<16x128xf32>
      %67 = tpu.matmul %65, %66, %cst_48 {dimension_numbers = #tpu.dot_dimension_numbers<[1], [0], [0], [1], [0, 0, 1, 1], [], []>} : vector<16x128xbf16>, vector<128x128xbf16>, vector<16x128xf32> -> vector<16x128xf32>
      %cst_49 = arith.constant 5.000000e-01 : f32
      %68 = vector.broadcast %cst_49 : f32 to vector<16x128xf32>
      %69 = arith.mulf %68, %67 : vector<16x128xf32>
      %cst_50 = arith.constant 0.707106769 : f32
      %70 = vector.broadcast %cst_50 : f32 to vector<16x128xf32>
      %71 = arith.mulf %67, %70 : vector<16x128xf32>
      %72 = math.erf %71 : vector<16x128xf32>
      %cst_51 = arith.constant 1.000000e+00 : f32
      %73 = vector.broadcast %cst_51 : f32 to vector<16x128xf32>
      %74 = arith.addf %73, %72 : vector<16x128xf32>
      %75 = arith.mulf %69, %74 : vector<16x128xf32>
      %76 = arith.truncf %75 : vector<16x128xf32> to vector<16x128xbf16>
      %c0_52 = arith.constant 0 : index
      %c0_53 = arith.constant 0 : index
      %77 = vector.load %arg10[%c0_52, %c0_53] : memref<128x128xbf16, #tpu.memory_space<vmem>>, vector<128x128xbf16>
      %cst_54 = arith.constant dense<0.000000e+00> : vector<16x128xf32>
      %78 = tpu.matmul %76, %77, %cst_54 {dimension_numbers = #tpu.dot_dimension_numbers<[1], [0], [0], [1], [0, 0, 1, 1], [], []>} : vector<16x128xbf16>, vector<128x128xbf16>, vector<16x128xf32> -> vector<16x128xf32>
      %c0_55 = arith.constant 0 : index
      %c0_56 = arith.constant 0 : index
      %c0_57 = arith.constant 0 : index
      %79 = vector.load %arg3[%c0_55, %c0_56, %c0_57] : memref<1x16x128xf32, #tpu.memory_space<vmem>>, vector<1x16x128xf32>
      %80 = vector.shape_cast %79 : vector<1x16x128xf32> to vector<16x128xf32>
      %81 = arith.addf %80, %78 : vector<16x128xf32>
      %c0_58 = arith.constant 0 : index
      %c0_59 = arith.constant 0 : index
      %c0_60 = arith.constant 0 : index
      %82 = vector.load %arg11[%c0_58, %c0_59, %c0_60] : memref<1x16x128xf32, #tpu.memory_space<vmem>>, vector<1x16x128xf32>
      %83 = vector.shape_cast %82 : vector<1x16x128xf32> to vector<16x128xf32>
      %84 = vector.shape_cast %81 : vector<16x128xf32> to vector<1x16x128xf32>
      tpu.vector_store %arg11[%c0_58, %c0_59, %c0_60], %84 {strides = array<i32>} : memref<1x16x128xf32, #tpu.memory_space<vmem>>, vector<1x16x128xf32>,
    } else {
    }
    return
  }
  func.func @transform_0(%arg0: i32, %arg1: i32, %arg2: i32) -> (i32, i32, i32) {
    %c0_i32 = arith.constant 0 : i32
    %c0_i32_0 = arith.constant 0 : i32
    return %arg0, %arg2, %c0_i32 : i32, i32, i32
  }
  func.func @transform_1(%arg0: i32, %arg1: i32, %arg2: i32) -> (i32, i32, i32, i32) {
    %c0_i32 = arith.constant 0 : i32
    %c0_i32_0 = arith.constant 0 : i32
    %c0_i32_1 = arith.constant 0 : i32
    return %arg0, %arg2, %c0_i32, %c0_i32_0 : i32, i32, i32, i32
  }
  func.func @transform_2(%arg0: i32, %arg1: i32, %arg2: i32) -> (i32, i32, i32, i32) {
    %c0_i32 = arith.constant 0 : i32
    %c0_i32_0 = arith.constant 0 : i32
    %c0_i32_1 = arith.constant 0 : i32
    return %arg0, %arg2, %c0_i32, %c0_i32_0 : i32, i32, i32, i32
  }
  func.func @transform_3(%arg0: i32, %arg1: i32, %arg2: i32) -> (i32, i32) {
    %c0_i32 = arith.constant 0 : i32
    %c0_i32_0 = arith.constant 0 : i32
    %c0_i32_1 = arith.constant 0 : i32
    return %c0_i32, %c0_i32_0 : i32, i32
  }
  func.func @transform_4(%arg0: i32, %arg1: i32, %arg2: i32) -> (i32, i32) {
    %c0_i32 = arith.constant 0 : i32
    %c0_i32_0 = arith.constant 0 : i32
    %c0_i32_1 = arith.constant 0 : i32
    return %c0_i32, %c0_i32_0 : i32, i32
  }
  func.func @transform_5(%arg0: i32, %arg1: i32, %arg2: i32) -> (i32, i32) {
    %c0_i32 = arith.constant 0 : i32
    %c0_i32_0 = arith.constant 0 : i32
    %c0_i32_1 = arith.constant 0 : i32
    return %c0_i32, %c0_i32_0 : i32, i32
  }
  func.func @transform_6(%arg0: i32, %arg1: i32, %arg2: i32) -> (i32, i32) {
    %c0_i32 = arith.constant 0 : i32
    %c0_i32_0 = arith.constant 0 : i32
    %c0_i32_1 = arith.constant 0 : i32
    return %c0_i32, %c0_i32_0 : i32, i32
  }
  func.func @transform_7(%arg0: i32, %arg1: i32, %arg2: i32) -> (i32, i32) {
    %c0_i32 = arith.constant 0 : i32
    %c0_i32_0 = arith.constant 0 : i32
    %c0_i32_1 = arith.constant 0 : i32
    return %c0_i32, %c0_i32_0 : i32, i32
  }
  func.func @transform_8(%arg0: i32, %arg1: i32, %arg2: i32) -> (i32, i32, i32) {
    %0 = arith.muli %arg1, %arg2 : i32
    %c0_i32 = arith.constant 0 : i32
    %c0_i32_0 = arith.constant 0 : i32
    return %arg0, %0, %c0_i32 : i32, i32, i32
  }
}

</mosaic_0001>

<bundles_post_ra>
// kernel: tpu_custom_call.1
= control target key start
LH: loop header
LB: loop body
LE: loop exit
PB: predicated region body
PF: predicated region fallthrough
CT: control target
= control target key end

     0   :  { %s2097_s0 = inlined_call_operand.hbm [shape: f32[2,64,128], index: 0, kind: input, shape index: {}]   ;;  %s2098_s1 = inlined_call_operand.hbm [shape: f32[2,4,2,128], index: 1, kind: input, shape index: {}]   ;;  %s2099_s2 = inlined_call_operand.hbm [shape: f32[2,4,2,128], index: 2, kind: input, shape index: {}]   ;;  %s2100_s3 = inlined_call_operand.hbm [shape: f32[5,128], index: 3, kind: input, shape index: {}]   ;;  %s2101_s4 = inlined_call_operand.vmem [shape: f32[1,128], index: 4, kind: input, shape index: {}]   ;;  %s2102_s5 = inlined_call_operand.vmem [shape: f32[1,128], index: 5, kind: input, shape index: {}]   ;;  %s2103_s6 = inlined_call_operand.hbm [shape: bf16[128,128], index: 6, kind: input, shape index: {}]   ;;  %s2104_s7 = inlined_call_operand.hbm [shape: bf16[128,128], index: 7, kind: input, shape index: {}]   ;;  %s2105_s8 = inlined_call_operand.hbm [shape: f32[2,64,128], index: 8, kind: output, shape index: {}]  }
   0x1   :  { %2125 = sst [smem:[#allocation37_spill]] %s2097_s0 }
   0x2   :  { %2126 = sst [smem:[#allocation38_spill]] %s2098_s1 }
   0x3   :  { %2127 = sst [smem:[#allocation39_spill]] %s2099_s2 }
   0x4   :  { %2128 = sst [smem:[#allocation40_spill]] %s2100_s3 }
   0x5   :  { %2129 = sst [smem:[#allocation41_spill]] %s2101_s4 }
   0x6   :  { %2130 = sst [smem:[#allocation42_spill]] %s2102_s5 }
   0x7   :  { %2131 = sst [smem:[#allocation43_spill]] %s2105_s8 }
   0x8   :  { %13 = vsyncpa [#allocation6], 0 }
   0x9   :  { %15 = vsyncpa [#allocation6 + $0x1], 0 }
   0xa   :  { %16 = vsyncpa [#allocation9], 0 }
   0xb   :  { %18 = vsyncpa [#allocation9 + $0x1], 0 }
   0xc   :  { %19 = vsyncpa [#allocation12], 0 }
   0xd   :  { %20 = vsyncpa [#allocation15], 0 }
   0xe   :  { %21 = vsyncpa [#allocation7], 0 }
   0xf   :  { %23 = vsyncpa [#allocation7 + $0x1], 0  ;;  %s1756_s27 = smov 0   ;;  %s1758_s28 = smov 0  }
  0x10   :  { %s1760_s29 = smov 0   ;;  %s1762_s30 = smov 0  }
  0x11   :  { %s1764_s9 = smov 0   ;;  %s1766_s10 = smov 0  }
  0x12   :  { %s1768_s11 = smov 0   ;;  %s1770_s12 = smov 0  }
  0x13   :  { %s1772_s13 = smov 0   ;;  %s1774_s14 = smov 0  }
  0x14   :  { %s1776_s15 = smov 0   ;;  %s1778_s16 = smov 0  }
  0x15   :  { %s1780_s17 = smov 0  }
  0x16 LB: > { %2132 = sst [smem:[#allocation22_spill]] %s1650_s27  ;;  %s1820_s18 = sadd.s32 4294967295, %s1698_s17   ;;  %s1698_s17 = sphi %s1780_s17, %s29_s17   ;;  %s1694_s16 = sphi %s1778_s16, %s2195_s16   ;;  %s1690_s15 = sphi %s1776_s15, %s2186_s15   ;;  %s1686_s14 = sphi %s1774_s14, %s2194_s14   ;;  %s1682_s13 = sphi %s1772_s13, %s2193_s13   ;;  %s1678_s12 = sphi %s1770_s12, %s2192_s12   ;;  %s1674_s11 = sphi %s1768_s11, %s2191_s11   ;;  %s1670_s10 = sphi %s1766_s10, %s2190_s10   ;;  %s1666_s9 = sphi %s1764_s9, %s2189_s9   ;;  %s1662_s30 = sphi %s1762_s30, %s2183_s30   ;;  %s1658_s29 = sphi %s1760_s29, %s2188_s29   ;;  %s1654_s28 = sphi %s1758_s28, %s2187_s28   ;;  %s1650_s27 = sphi %s1756_s27, %s2182_s27  }
  0x17   : > { %2133 = sst [smem:[#allocation23_spill]] %s1654_s28  ;;  %s1069_s19 = sadd.s32 4294967294, %s1698_s17  }
  0x18   : > { %2134 = sst [smem:[#allocation24_spill]] %s1666_s9  ;;  %p70_p0 = scmp.ne.s32.totalorder %s1666_s9, %s1662_s30 }
  0x19   : > { %2135 = sst [smem:[#allocation25_spill]] %s1674_s11  ;;  %p71_p1 = scmp.eq.s32.totalorder %s1820_s18, 0 }
  0x1a   : > { %2136 = sst [smem:[#allocation26_spill]] %s1678_s12  ;;  %p258_p2 = scmp.ne.s32.totalorder %s1658_s29, %s1654_s28 }
  0x1b   : > { %2137 = sst [smem:[#allocation27_spill]] %s1682_s13  ;;  %p1830_p3 = por %p71_p1, %p70_p0 }
  0x1c   : > { %2138 = sst [smem:[#allocation28_spill]] %s1690_s15  ;;  %p259_p4 = scmp.eq.s32.totalorder %s1820_s18, 15 }
  0x1d   : > { %2139 = sst [smem:[#allocation29_spill]] %s1698_s17  ;;  %p264_p5 = scmp.ne.s32.totalorder %s1654_s28, %s1650_s27 }
  0x1e   : > { %2140 = sst [smem:[#allocation30_spill]] %s1820_s18  ;;  %p265_p6 = scmp.eq.s32.totalorder %s1069_s19, 15 }
  0x1f   : > { %s2141_s21 = scalar_select %p1830_p3, 1, 0 }
  0x20   : > { %p1837_p7 = por %p259_p4, %p258_p2  ;;  %p1070_p8 = scmp.ge.s32.totalorder %s1698_s17, 1 }
  0x21   : > { %2142 = sst [smem:[#allocation31_spill]] %s2141_s21  ;;  %p1842_p9 = por %p265_p6, %p264_p5 }
  0x22   : > { %s2143_s22 = scalar_select %p1837_p7, 1, 0 }
  0x23   : > { %s2145_s23 = scalar_select %p1842_p9, 1, 0 }
  0x24   : > { %2144 = sst [smem:[#allocation32_spill]] %s2143_s22  ;;  %p272_p10 = scmp.lt.s32.totalorder %s1698_s17, 17 }
  0x25   : > { %2146 = sst [smem:[#allocation33_spill]] %s2145_s23  ;;  %s1700_s19 = smov [#allocation11]  }
  0x26   : > { %s2147_s3 = sld [smem:[#allocation40_spill]]  ;;  %p1850_p11 = pnand %p1070_p8, %p272_p10 }
  0x27   : > { %s286_s20 = sshll.u32 %s1700_s19, 4  ;;  %s41_s25 = sadd.s32 1, %s1686_s14  ;;  %s287_s20 = int_to_ptr.vmem [resolvable:$true] %s286_s20 }
  0x28   : > { %s2148_s30 = scalar_select %p1850_p11, 1, 0 }
  0x29   : > { %p1207_p12 = pneg %p1850_p11  ;;  %p42_p0 = scmp.ge.s32.totalorder %s41_s25, 4 }
  0x2a   : > { %2149 = sst [smem:[#allocation34_spill]] %s2148_s30  ;;  %s48_s23 = sadd.s32 1, %s1694_s16 }
  0x2b   : > { %p1858_p13 = pnand %p1207_p12, %p71_p1  ;;  %s57_s27 = sadd.s32 1, %s1670_s10 }
  0x2c   : > { %s284_s26 = sshll.u32 %s2147_s3, 4  ;;  %s44_s3 = sadd.s32 1, %s1690_s15  ;;  %s285_s26 = int_to_ptr.hbm [resolvable:$true] %s284_s26 }
  0x2d   : > { %1210 = dma.hbm_to_vmem [thread:$0]  (!%p1858_p13), %s285_s26, 128, %s287_s20, [#allocation12]  }
  0x2e   : > { %s2197_s25 = smov (%p42_p0, %s41_s25), 0  ;;  %s2199_s3 = smov (!%p42_p0, %s44_s3), %s1690_s15 }
  0x2f   : > { %2151 = sst [smem:[#allocation35_spill]] %s2197_s25  ;;  %s53_s19 = ssub.s32 %s1686_s14, %s2197_s25 }
  0x30   : > { %p64_p2 = scmp.ne.s32.totalorder %s1670_s10, %s1666_s9  ;;  %p46_p4 = scmp.ge.s32.totalorder %s2199_s3, 2 }
  0x31   : > { %p65_p5 = scmp.eq.s32.totalorder %s1698_s17, 0  ;;  %s241_s8 = smul.u32 %s1686_s14, %s1690_s15 }
  0x32   : > { %p1234_p6 = scmp.lt.s32.totalorder %s1698_s17, 16  ;;  %s2201_s3 = smov (%p46_p4, %s2199_s3), 0 }
  0x33   : > { %2152 = sst [smem:[#allocation36_spill]] %s2201_s3  ;;  %s2203_s23 = smov (!%p46_p4, %s48_s23), %s1694_s16 }
  0x34   : > { %p66_p8 = por %p65_p5, %p64_p2  ;;  %s242_s20 = smul.u32 %s2201_s3, %s2197_s25 }
  0x35   : > { %p50_p10 = scmp.ge.s32.totalorder %s2203_s23, 2  ;;  %s1885_s26 = sand.u32 1, %s1670_s10  }
  0x36   : > { %s244_s22 = ssub.s32 %s241_s8, %s242_s20  ;;  %p1887_p12 = pnand %p1234_p6, %p66_p8 }
  0x37   : > { %s2205_s23 = smov (%p50_p10, %s2203_s23), 0  ;;  %s355_s13 = sand.u32 1, %s1698_s17  }
  0x38   : > { %s52_s5 = ssub.s32 %s1694_s16, %s2205_s23  ;;  %s2124_s3 = sshll.u32 %s1885_s26, 1 }
  0x39   : > { %s54_s4 = sor.u32 %s53_s19, %s52_s5  ;;  %s245_s11 = sor.u32 %s244_s22, %s52_s5 }
  0x3a   : > { %p55_p0 = scmp.eq.s32.totalorder %s54_s4, 0  ;;  %p246_p2 = scmp.eq.s32.totalorder %s245_s11, 0 }
  0x3b   : > { %s1080_s25 = sshll.u32 %s1694_s16, 2  ;;  %s2154_s28 = sadd.s32 1, %s1658_s29 }
  0x3c   : > { %s1899_s12 = scalar_select %p55_p0, %s1670_s10, %s57_s27  }
  0x3d   : > { %s1904_s8 = scalar_select %p246_p2, %s1658_s29, %s2154_s28  }
  0x3e   : > { %s363_s20 = sadd.s32 %s1686_s14, %s1080_s25  ;;  %s359_s21 = scalar_lea.vmem [#allocation8], %s2124_s3 }
  0x3f   : > { %s1081_s18 = sshll.u32 %s363_s20, 1  ;;  %s369_s9 = sshll.u32 %s359_s21, 4  ;;  %s370_s9 = int_to_ptr.vmem [resolvable:$true] %s369_s9 }
  0x40   : > { %s2155_s1 = sld [smem:[#allocation38_spill]]  ;;  %s1917_s28 = scalar_lea.sflag [#allocation9], %s355_s13 }
  0x41   : > { %s2156_s2 = sld [smem:[#allocation39_spill]]  ;;  %s301_s17 = sshll.u32 %s2103_s6, 4  ;;  %s302_s17 = int_to_ptr.hbm [resolvable:$true] %s301_s17 }
  0x42   : > { %s1701_s30 = smov [#allocation13]   ;;  %s1702_s13 = smov 64  }
  0x43   : > { %s303_s19 = sshll.u32 %s1701_s30, 4  ;;  %s1703_s11 = smov 4   ;;  %s304_s19 = int_to_ptr.vmem [resolvable:$true] %s303_s19 }
  0x44   : > { %1213 = dma.hbm_to_vmem [thread:$0]  (!%p1858_p13), %s302_s17, 1024, %s304_s19, [#allocation12], %s1702_s13, %s1702_s13, %s1703_s11  }
  0x45   : > { %s1075_s22 = sshll.u32 %s1885_s26, 4  ;;  %s1076_s21 = sshll.u32 %s1686_s14, 1 }
  0x46   : > { %s365_s5 = scalar_lea.hbm %s2155_s1, %s1081_s18  ;;  %s1077_s25 = sshll.u32 %s1694_s16, 3 }
  0x47   : > { %s367_s4 = sshll.u32 %s365_s5, 4  ;;  %s1915_s27 = scalar_lea.hbm %s2156_s2, %s1081_s18  ;;  %s368_s4 = int_to_ptr.hbm [resolvable:$true] %s367_s4 }
  0x48   : > { %1223 = dma.hbm_to_vmem [thread:$0]  (!%p1887_p12), %s368_s4, 32, %s370_s9, %s1917_s28  }
  0x49   : > { %s315_s5 = sshll.u32 %s2104_s7, 4  ;;  %s1704_s9 = smov [#allocation14]   ;;  %s316_s5 = int_to_ptr.hbm [resolvable:$true] %s315_s5 }
  0x4a   : > { %s317_s4 = sshll.u32 %s1704_s9, 4  ;;  %s335_s30 = scalar_lea.vmem [#allocation5], %s1075_s22  ;;  %s318_s4 = int_to_ptr.vmem [resolvable:$true] %s317_s4 }
  0x4b   : > { %1216 = dma.hbm_to_vmem [thread:$0]  (!%p1858_p13), %s316_s5, 1024, %s318_s4, [#allocation15], %s1702_s13, %s1702_s13, %s1703_s11  }
  0x4c   : > { %s345_s20 = sshll.u32 %s335_s30, 4  ;;  %s340_s18 = sadd.s32 %s1077_s25, %s1076_s21  ;;  %s346_s20 = int_to_ptr.vmem [resolvable:$true] %s345_s20 }
  0x4d   : > { %s1078_s17 = sshll.u32 %s340_s18, 3  ;;  %s2157_s0 = sld [smem:[#allocation37_spill]] }
  0x4e   : > { %s388_s2 = sshll.u32 %s1915_s27, 4  ;;  %s332_s24 = scalar_lea.sflag [#allocation6], %s1885_s26  ;;  %s389_s2 = int_to_ptr.hbm [resolvable:$true] %s388_s2 }
  0x4f   : > { %s1705_s5 = smov 128   ;;  %s1706_s13 = smov 8  }
  0x50   : > { %s2158_s11 = sshll.u32 %s1885_s26, 1  ;;  %s2160_s3 = sld [smem:[#allocation24_spill]] (!%p1850_p11) }
  0x51   : > { %s380_s4 = scalar_lea.vmem [#allocation10], %s2158_s11 }
  0x52   : > { %s390_s22 = sshll.u32 %s380_s4, 4  ;;  %399 = sbr.rel (%p1850_p11) target bundleno = 849 (0x351), region = 52  ;;  %s391_s22 = int_to_ptr.vmem [resolvable:$true] %s390_s22 }
  0x53   : > { %s342_s9 = scalar_lea.hbm %s2157_s0, %s1078_s17 }
  0x54   : > { %s343_s1 = sshll.u32 %s342_s9, 4  ;;  %s344_s1 = int_to_ptr.hbm [resolvable:$true] %s343_s1 }
  0x55   : > { %1220 = dma.hbm_to_vmem [thread:$0]  (!%p1887_p12), %s344_s1, 256, %s346_s20, %s332_s24, %s1705_s5, %s1705_s5, %s1706_s13  }
  0x56   : > { %1226 = dma.hbm_to_vmem [thread:$0]  (!%p1887_p12), %s389_s2, 32, %s391_s22, %s1917_s28  }
  0x57   : > { %s401_s30 = sand.u32 1, %s2160_s3  }
  0x58   : > { %s1086_s27 = sshll.u32 %s401_s30, 4  ;;  %s402_s18 = scalar_lea.sflag [#allocation6], %s401_s30 }
  0x59   : > { %s1950_s17 = scalar_lea.vmem [#allocation5], %s1086_s27 }
  0x5a   : > { %1629 = dma.done.wait (%p1830_p3), %s402_s18, 256  }
  0x5b   : > { %1631 = vsyncadd (%p1830_p3), %s402_s18, 4294967040  ;;  %s2162_s1 = sld [smem:[#allocation30_spill]]  ;;  %s1087_s15 = sshll.u32 %s401_s30, 1 }
  0x5c   : > { %s415_s28 = scalar_lea.vmem [#allocation8], %s1087_s15 }
  0x61   : > { %s411_s26 = sand.u32 1, %s2162_s1  }
  0x62   : > { %s412_s2 = scalar_lea.sflag [#allocation9], %s411_s26 }
  0x63   : > { %1633 = dma.done.wait (%p1830_p3), %s412_s2, 64  }
  0x64   : > { %1635 = vsyncadd (%p1830_p3), %s412_s2, 4294967232  ;;  %s425_s20 = scalar_lea.vmem [#allocation10], %s1087_s15 }
  0x65   : > { %1637 = dma.done.wait (%p71_p1), [#allocation12], 1152  }
  0x66   : > { %1639 = vsyncadd (%p71_p1), [#allocation12], 4294966144 }
  0x67   : > { %1641 = dma.done.wait (%p71_p1), [#allocation15], 1024  }
  0x68   : > { %1643 = vsyncadd (%p71_p1), [#allocation15], 4294966272  ;;  %s2163_s19 = sld [smem:[#allocation23_spill]]  ;;  %v487_v0 = vld [vmem:[%s415_s28] sm:$0x3]  ;;  %v490_v2 = vld [vmem:[%s1950_s17 + $0x8] sm:$0xff] }
  0x69   : > { %s2164_s9 = sld [smem:[#allocation26_spill]]  ;;  %v489_v1 = vld [vmem:[%s1950_s17] sm:$0xff]  ;;  %488 = vst [vmem:[#allocation2] sm:$0x3] %v487_v0  ;;  %v1354_v3 = vld [vmem:[#allocation11] ss:$0 sm:$0xff] }
  0x6a   : > { %s2165_s24 = sld [smem:[#allocation25_spill]]  ;;  %491 = vst [vmem:[#allocation2 + $0x2] sm:$0xff] %v489_v1  ;;  %v493_v4 = vld [vmem:[%s425_s20] sm:$0x3]  ;;  %v1355_v5 = vld [vmem:[#allocation11 + $0x1] ss:$0 sm:$0xff] }
  0x6b   : > { %492 = vst [vmem:[#allocation2 + $0xa] sm:$0xff] %v490_v2  ;;  %v1356_v6 = vld [vmem:[#allocation11 + $0x2] ss:$0 sm:$0xff]  ;;  %v1357_v14 = vld [vmem:[#allocation11 + $0x3] ss:$0 sm:$0xff] }
  0x6c   : > { %494 = vst [vmem:[#allocation2 + $0x12] sm:$0x3] %v493_v4  ;;  %v513_v11 = vmul.f32 %v1356_v6, %v489_v1  ;;  %v514_v17 = vmul.f32 %v1356_v6, %v490_v2  ;;  %v1358_v20 = vld [vmem:[#allocation11 + $0x4] ss:$0 sm:$0xff] }
  0x6e   : > { %s481_s5 = sand.u32 1, %s2163_s19  }
  0x6f   : > { %p533_p3 = scmp.eq.s32.totalorder %s2164_s9, 0  ;;  %s1973_s13 = sshll.u32 %s481_s5, 4 }
  0x70   : > { %p534_p11 = scmp.eq.s32.totalorder %s2165_s24, 0  ;;  %s1987_s4 = scalar_lea.vmem [#allocation16], %s1973_s13 }
  0x71   : > { %v495_v7 = vld [vmem:[#allocation2] sm:$0xff] }
  0x72   : > { %p1976_p13 = pnand %p534_p11, %p533_p3  ;;  %v501_v8 = vld [vmem:[#allocation2 + $0x1] sm:$0xff]  ;;  %v499_v9 = vmul.f32 %v1354_v3, %v495_v7  ;;  %v502_v13 = vld [vmem:[#allocation2 + $0x9] sm:$0xff] }
  0x73   : > { %v505_v10 = vmul.f32 %v1355_v5, %v501_v8  ;;  %v496_v12 = vld [vmem:[#allocation2 + $0x8] sm:$0xff]  ;;  %v506_v16 = vmul.f32 %v1355_v5, %v502_v13 }
  0x74   : > { %v500_v15 = vmul.f32 %v1354_v3, %v496_v12  ;;  %v517_v18 = vld [vmem:[#allocation2 + $0x3] sm:$0xff]  ;;  %v518_v23 = vld [vmem:[#allocation2 + $0xb] sm:$0xff] }
  0x75   : > { %v507_v19 = vadd.f32 %v505_v10, %v499_v9  ;;  %v525_v22 = vld [vmem:[#allocation2 + $0x4] sm:$0xff]  ;;  %v521_v25 = vmul.f32 %v1357_v14, %v517_v18  ;;  %v526_v26 = vld [vmem:[#allocation2 + $0xc] sm:$0xff]  ;;  %v522_v28 = vmul.f32 %v1357_v14, %v518_v23 }
  0x76   : > { %v508_v21 = vadd.f32 %v506_v16, %v500_v15  ;;  %v529_v30 = vmul.f32 %v1358_v20, %v525_v22  ;;  %v530_v32 = vmul.f32 %v1358_v20, %v526_v26 }
  0x77   : > { %v515_v24 = vadd.f32 %v513_v11, %v507_v19 }
  0x78   : > { %v516_v27 = vadd.f32 %v514_v17, %v508_v21  ;;  %538 = sbr.rel (%p1976_p13) target bundleno = 128 (0x80), region = 80 }
  0x79   : > { %v523_v29 = vadd.f32 %v521_v25, %v515_v24 }
  0x7a   : > { %v524_v31 = vadd.f32 %v522_v28, %v516_v27 }
  0x7b   : > { %v1982_v33 = vadd.f32 %v529_v30, %v523_v29 }
  0x7c   : > { %v1984_v34 = vadd.f32 %v530_v32, %v524_v31 }
  0x7d   : > { %vm539_vm0 = vcmask 0   ;;  %v1707_v35 = vmov 0.0  }
  0x7e   : > { %540 = vst.msk [vmem:[#allocation3] sm:$0x1] %vm539_vm0, %v1707_v35 }
  0x7f   : > { %541 = vst.msk [vmem:[#allocation4] sm:$0x1] %vm539_vm0, %v1707_v35 }
  0x80 PF: > { %s2167_s22 = sld [smem:[#allocation26_spill]] }
  0x86   : > { %p1093_p1 = scmp.ne.s32.totalorder %s2167_s22, 0 }
  0x88   : > { %544 = sbr.rel (%p1093_p1) target bundleno = 333 (0x14d), region = 84 }
  0x8d   : > { %v546_v36 = vadd.f32 %v1984_v34, %v1982_v33  ;;  %v561_v37 = vmul.f32 %v1982_v33, %v1982_v33  ;;  %v562_v38 = vmul.f32 %v1984_v34, %v1984_v34  ;;  %v545_v54 = vld [vmem:[#allocation3] sm:$0x1]  ;;  %vm558_vm1 = vcmask 0   ;;  %v560_v57 = vld [vmem:[#allocation4] sm:$0x1] }
  0x8f   : > { %547 = vadd.xlane.f32.xlu0 %v546_v36  ;;  %v563_v39 = vadd.f32 %v562_v38, %v561_v37 }
  0x97   : > { %564 = vadd.xlane.f32.xlu0 %v563_v39 }
 0x102   : > { %v548_v40 = vpop.xlane.xlu0 %547 }
 0x103   : > { %v549_v41 = vrot.slane %v548_v40, 4 }
 0x105   : > { %v550_v42 = vadd.f32 %v549_v41, %v548_v40 }
 0x107   : > { %v551_v43 = vrot.slane %v550_v42, 2 }
 0x109   : > { %v552_v44 = vadd.f32 %v551_v43, %v550_v42 }
 0x10a   : > { %v565_v45 = vpop.xlane.xlu0 %564 }
 0x10b   : > { %v566_v46 = vrot.slane %v565_v45, 4  ;;  %v553_v47 = vrot.slane %v552_v44, 1 }
 0x10d   : > { %v567_v48 = vadd.f32 %v566_v46, %v565_v45  ;;  %v554_v49 = vadd.f32 %v553_v47, %v552_v44 }
 0x10f   : > { %v568_v50 = vrot.slane %v567_v48, 2  ;;  %1183 = vpush %v554_v49 }
 0x111   : > { %v569_v51 = vadd.f32 %v568_v50, %v567_v48 }
 0x113   : > { %v570_v52 = vrot.slane %v569_v51, 1 }
 0x115   : > { %v571_v53 = vadd.f32 %v570_v52, %v569_v51 }
 0x117   : > { %1185 = vpush %v571_v53 }
 0x140   : > { %s1184_s21 = spop %1183 }
 0x141   : > { %v556_v55 = vstv %s1184_s21 }
 0x142   : > { %v557_v56 = vadd.f32 %v556_v55, %v545_v54 }
 0x144   : > { %559 = vst.msk [vmem:[#allocation3] sm:$0x1] %vm558_vm1, %v557_v56 }
 0x148   : > { %s1186_s3 = spop %1185 }
 0x149   : > { %v573_v58 = vstv %s1186_s3 }
 0x14a   : > { %v574_v59 = vadd.f32 %v573_v58, %v560_v57 }
 0x14c   : > { %575 = vst.msk [vmem:[#allocation4] sm:$0x1] %vm558_vm1, %v574_v59 }
 0x14d PF: > { %s2168_s25 = sld [smem:[#allocation26_spill]] }
 0x153   : > { %p1094_p4 = scmp.ne.s32.totalorder %s2168_s25, 1 }
 0x154   : > { %s2169_s18 = sld [smem:[#allocation41_spill]] (!%p1094_p4) }
 0x155   : > { %579 = sbr.rel (%p1094_p4) target bundleno = 822 (0x336), region = 88  ;;  %s2170_s15 = sld [smem:[#allocation42_spill]] (!%p1094_p4) }
 0x15a   : > { %v580_v60 = vld [vmem:[#allocation3] sm:$0x1]  ;;  %v582_v61 = vld [vmem:[#allocation4] sm:$0x1]  ;;  %v1174_v62 = vld [vmem:[#allocation13 + $0x38] sm:$0xff]  ;;  %v1708_v63 = vmov 0  }
 0x15b   : > { %1359 = vset.pattern.permute.xlu0 %v1708_v63  ;;  %v581_v0 = vmul.f32 0.00390625, %v580_v60  ;;  %v583_v1 = vmul.f32 0.00390625, %v582_v61  ;;  %690 = vmatpush.bf16.msra.mxu0 %v1174_v62  ;;  %v1173_v2 = vld [vmem:[#allocation13 + $0x30] sm:$0xff]  ;;  %v1172_v6 = vld [vmem:[#allocation13 + $0x28] sm:$0xff]  ;;  %v1171_v8 = vld [vmem:[#allocation13 + $0x20] sm:$0xff] }
 0x15c   : > { %v1170_v17 = vld [vmem:[#allocation13 + $0x18] sm:$0xff]  ;;  %v1169_v18 = vld [vmem:[#allocation13 + $0x10] sm:$0xff]  ;;  %v1168_v19 = vld [vmem:[#allocation13 + $0x8] sm:$0xff] }
 0x15d   : > { %v598_v3 = vperm.slane %v581_v0, 0  ;;  %v584_v4 = vmul.f32 %v581_v0, %v581_v0  ;;  %v1167_v20 = vld [vmem:[#allocation13] sm:$0xff]  ;;  %v1360_v24 = vld [vmem:[%s2169_s18] ss:$0 sm:$0xff]  ;;  %v1180_v42 = vld [vmem:[#allocation14 + $0x28] sm:$0xff] }
 0x15e   : > { %v1361_v28 = vld [vmem:[%s2170_s15] ss:$0 sm:$0xff]  ;;  %v1179_v48 = vld [vmem:[#allocation14 + $0x20] sm:$0xff]  ;;  %v1178_v54 = vld [vmem:[#allocation14 + $0x18] sm:$0xff] }
 0x15f   : > { %600 = vperm.xlu0 %1359, %v598_v3   ;;  %v585_v5 = vsub.f32 %v583_v1, %v584_v4  ;;  %691 = vmatpush.bf16.msra.mxu0 %v1173_v2  ;;  %v1181_v38 = vld [vmem:[#allocation14 + $0x30] sm:$0xff] }
 0x160   : > { %v1177_v62 = vld [vmem:[#allocation14 + $0x10] sm:$0xff] }
 0x161   : > { %v586_v7 = vadd.f32 1e-05, %v585_v5 }
 0x163   : > { %1362 = vrsqrt.f32 %v586_v7  ;;  %692 = vmatpush.bf16.msra.mxu0 %v1172_v6  ;;  %vm593_vm2 = vweird.f32 %v586_v7  ;;  %v1176_v6 = vld [vmem:[#allocation14 + $0x8] sm:$0xff] }
 0x167   : > { %693 = vmatpush.bf16.msra.mxu0 %v1171_v8 }
 0x169   : > { %v1363_v9 = vpop.eup %1362 }
 0x16a   : > { %v588_v10 = vmul.f32 %v1363_v9, %v586_v7  ;;  %vm594_vm3 = vweird.f32 %v1363_v9 }
 0x16b   : > { %vm595_vm4 = vmor %vm593_vm2, %vm594_vm3  ;;  %694 = vmatpush.bf16.msra.mxu0 %v1170_v17 }
 0x16c   : > { %v589_v11 = vmul.f32 %v1363_v9, %v588_v10 }
 0x16e   : > { %v590_v12 = vmul.f32 0.5, %v589_v11 }
 0x16f   : > { %695 = vmatpush.bf16.msra.mxu0 %v1169_v18 }
 0x170   : > { %v591_v13 = vsub.f32 1.5, %v590_v12  ;;  %v1175_v12 = vld [vmem:[#allocation14] sm:$0xff] }
 0x172   : > { %v592_v14 = vmul.f32 %v1363_v9, %v591_v13 }
 0x173   : > { %696 = vmatpush.bf16.msra.mxu0 %v1168_v19 }
 0x174   : > { %v596_v15 = vsel %vm595_vm4, %v1363_v9, %v592_v14 }
 0x175   : > { %v606_v16 = vperm.slane %v596_v15, 0 }
 0x177   : > { %608 = vperm.xlu0 %1359, %v606_v16   ;;  %697 = vmatpush.bf16.msra.mxu0 %v1167_v20 }
 0x1d1   : > { %v601_v21 = vpop.permute.xlu0 %600 }
 0x1d2   : > { %v603_v22 = vsub.f32 %v1982_v33, %v601_v21  ;;  %v604_v23 = vsub.f32 %v1984_v34, %v601_v21  ;;  %v1182_v33 = vld [vmem:[#allocation14 + $0x38] sm:$0xff] }
 0x1d3   : > { %857 = vmatpush.bf16.msra.mxu1 %v1182_v33 }
 0x1d7   : > { %858 = vmatpush.bf16.msra.mxu1 %v1181_v38 }
 0x1db   : > { %859 = vmatpush.bf16.msra.mxu1 %v1180_v42 }
 0x1df   : > { %860 = vmatpush.bf16.msra.mxu1 %v1179_v48 }
 0x1e3   : > { %861 = vmatpush.bf16.msra.mxu1 %v1178_v54 }
 0x1e7   : > { %862 = vmatpush.bf16.msra.mxu1 %v1177_v62 }
 0x1e9   : > { %v609_v25 = vpop.permute.xlu0 %608 }
 0x1ea   : > { %v611_v26 = vmul.f32 %v609_v25, %v603_v22  ;;  %v612_v27 = vmul.f32 %v609_v25, %v604_v23 }
 0x1eb   : > { %863 = vmatpush.bf16.msra.mxu1 %v1176_v6 }
 0x1ec   : > { %v617_v29 = vmul.f32 %v1360_v24, %v611_v26  ;;  %v618_v30 = vmul.f32 %v1360_v24, %v612_v27 }
 0x1ee   : > { %v623_v31 = vadd.f32 %v1361_v28, %v617_v29  ;;  %v624_v32 = vadd.f32 %v1361_v28, %v618_v30 }
 0x1ef   : > { %864 = vmatpush.bf16.msra.mxu1 %v1175_v12 }
 0x1f0   : > { %v625_v35 = vpack.c.bf16 %v624_v32, %v623_v31 }
 0x1f2   : > { %698 = vmatmul.bf16.vlgmr.msra.gmra.mxu0 %v625_v35 }
 0x26f   : > { %v2007_v36 = vpop.f32.mrf.mxu0 }
 0x270   : > { %v2010_v34 = vmul.f32 0.70710677, %v2007_v36 }
 0x272   : > { %v708_v37 = vmul.f32 %v2010_v34, %v2010_v34 }
 0x274   : > { %v709_v39 = vmin.f32 %v708_v37, 16.0 }
 0x276   : > { %v710_v40 = vmul.f32 2.1237322e-06, %v709_v39  ;;  %v721_v41 = vmul.f32 3.8918573e-05, %v709_v39 }
 0x277   : > { %v2014_v43 = vpop.f32.mrf.mxu0 }
 0x278   : > { %v711_v44 = vadd.f32 0.00028619796, %v710_v40  ;;  %v722_v45 = vadd.f32 0.001143296, %v721_v41  ;;  %v2017_v46 = vmul.f32 0.70710677, %v2014_v43 }
 0x27a   : > { %v723_v47 = vmul.f32 %v722_v45, %v709_v39  ;;  %v748_v49 = vmul.f32 %v2017_v46, %v2017_v46  ;;  %v712_v50 = vmul.f32 %v711_v44, %v709_v39 }
 0x27c   : > { %v724_v51 = vadd.f32 0.014752088, %v723_v47  ;;  %v749_v52 = vmin.f32 %v748_v49, 16.0  ;;  %v713_v57 = vadd.f32 0.0036580483, %v712_v50 }
 0x27e   : > { %v725_v53 = vmul.f32 %v724_v51, %v709_v39  ;;  %v750_v55 = vmul.f32 2.1237322e-06, %v749_v52  ;;  %v761_v56 = vmul.f32 3.8918573e-05, %v749_v52  ;;  %v714_v1 = vmul.f32 %v713_v57, %v709_v39 }
 0x27f   : > { %v705_v57 = vmul.f32 0.5, %v2014_v43 }
 0x280   : > { %v726_v58 = vadd.f32 0.112945676, %v725_v53  ;;  %v751_v59 = vadd.f32 0.00028619796, %v750_v55  ;;  %v762_v60 = vadd.f32 0.001143296, %v761_v56 }
 0x281   : > { %v715_v8 = vadd.f32 0.05243302, %v714_v1  ;;  %v704_v56 = vmul.f32 0.5, %v2007_v36 }
 0x282   : > { %v727_v61 = vmul.f32 %v726_v58, %v709_v39  ;;  %v752_v63 = vmul.f32 %v751_v59, %v749_v52  ;;  %v763_v0 = vmul.f32 %v762_v60, %v749_v52 }
 0x283   : > { %v716_v14 = vmul.f32 %v715_v8, %v709_v39 }
 0x284   : > { %v728_v2 = vadd.f32 0.4994258, %v727_v61  ;;  %v753_v3 = vadd.f32 0.0036580483, %v752_v63  ;;  %v764_v4 = vadd.f32 0.014752088, %v763_v0 }
 0x285   : > { %v717_v19 = vadd.f32 0.18741608, %v716_v14  ;;  %v872_v0 = vld [vmem:[%s1950_s17 + $0x8] sm:$0xff] }
 0x286   : > { %v729_v5 = vmul.f32 %v728_v2, %v709_v39  ;;  %v765_v7 = vmul.f32 %v764_v4, %v749_v52  ;;  %v754_v10 = vmul.f32 %v753_v3, %v749_v52 }
 0x287   : > { %v718_v24 = vmul.f32 %v717_v19, %v709_v39 }
 0x288   : > { %v730_v9 = vadd.f32 1.0, %v729_v5  ;;  %v766_v11 = vadd.f32 0.112945676, %v765_v7  ;;  %v755_v15 = vadd.f32 0.05243302, %v754_v10 }
 0x289   : > { %v719_v30 = vadd.f32 1.1283791, %v718_v24 }
 0x28a   : > { %1364 = vrcp.f32 %v730_v9  ;;  %v767_v13 = vmul.f32 %v766_v11, %v749_v52  ;;  %v756_v21 = vmul.f32 %v755_v15, %v749_v52  ;;  %v742_v26 = vand.u32 2147483648, %v730_v9 }
 0x28b   : > { %v740_v28 = vand.u32 2147483647, %v730_v9  ;;  %vm736_vm6 = vweird.f32 %v730_v9  ;;  %v720_v40 = vmul.f32 %v719_v30, %v2010_v34 }
 0x28c   : > { %v768_v16 = vadd.f32 0.4994258, %v767_v13  ;;  %v757_v27 = vadd.f32 0.18741608, %v756_v21  ;;  %v743_v35 = vor.u32 1.1754944e-38, %v742_v26 }
 0x28d   : > { %vm741_vm8 = vcmp.eq.f32.partialorder %v740_v28, 8.507059e+37 }
 0x28e   : > { %v769_v17 = vmul.f32 %v768_v16, %v749_v52  ;;  %v758_v33 = vmul.f32 %v757_v27, %v749_v52 }
 0x290   : > { %v1365_v18 = vpop.eup %1364  ;;  %v770_v22 = vadd.f32 1.0, %v769_v17  ;;  %v759_v39 = vadd.f32 1.1283791, %v758_v33 }
 0x291   : > { %v732_v20 = vmul.f32 %v1365_v18, %v730_v9  ;;  %vm737_vm5 = vweird.f32 %v1365_v18 }
 0x292   : > { %1366 = vrcp.f32 %v770_v22  ;;  %vm738_vm7 = vmor %vm736_vm6, %vm737_vm5  ;;  %v782_v42 = vand.u32 2147483648, %v770_v22  ;;  %v780_v47 = vand.u32 2147483647, %v770_v22  ;;  %vm776_vm10 = vweird.f32 %v770_v22 }
 0x293   : > { %v733_v23 = vsub.f32 1.0, %v732_v20  ;;  %v760_v50 = vmul.f32 %v759_v39, %v2017_v46  ;;  %v871_v46 = vld [vmem:[%s1950_s17] sm:$0xff] }
 0x294   : > { %v783_v49 = vor.u32 1.1754944e-38, %v782_v42  ;;  %vm781_vm12 = vcmp.eq.f32.partialorder %v780_v47, 8.507059e+37 }
 0x295   : > { %v734_v25 = vmul.f32 %v1365_v18, %v733_v23 }
 0x297   : > { %v735_v29 = vadd.f32 %v1365_v18, %v734_v25 }
 0x298   : > { %v1367_v31 = vpop.eup %1366 }
 0x299   : > { %v739_v32 = vsel %vm738_vm7, %v1365_v18, %v735_v29  ;;  %v772_v37 = vmul.f32 %v1367_v31, %v770_v22  ;;  %vm777_vm9 = vweird.f32 %v1367_v31 }
 0x29a   : > { %v744_v38 = vsel %vm741_vm8, %v743_v35, %v739_v32  ;;  %vm778_vm11 = vmor %vm776_vm10, %vm777_vm9 }
 0x29b   : > { %v773_v41 = vsub.f32 1.0, %v772_v37  ;;  %v745_v44 = vmul.f32 %v744_v38, %v720_v40 }
 0x29d   : > { %v774_v45 = vmul.f32 %v1367_v31, %v773_v41  ;;  %v1127_v52 = vclamps-f32 %v745_v44, 1.0 }
 0x29f   : > { %v775_v48 = vadd.f32 %v1367_v31, %v774_v45  ;;  %v788_v55 = vadd.f32 1.0, %v1127_v52 }
 0x2a1   : > { %v779_v51 = vsel %vm778_vm11, %v1367_v31, %v775_v48  ;;  %v790_v60 = vmul.f32 %v788_v55, %v704_v56 }
 0x2a2   : > { %v784_v34 = vsel %vm781_vm12, %v783_v49, %v779_v51 }
 0x2a3   : > { %v785_v53 = vmul.f32 %v784_v34, %v760_v50 }
 0x2a5   : > { %v1128_v54 = vclamps-f32 %v785_v53, 1.0 }
 0x2a7   : > { %v789_v58 = vadd.f32 1.0, %v1128_v54 }
 0x2a9   : > { %v791_v59 = vmul.f32 %v789_v58, %v705_v57 }
 0x2ab   : > { %v792_v61 = vpack.c.bf16 %v791_v59, %v790_v60 }
 0x2ad   : > { %865 = vmatmul.bf16.vlgmr.msra.gmra.mxu1 %v792_v61 }
 0x32a   : > { %v866_v62 = vpop.f32.mrf.mxu1 }
 0x32b   : > { %v873_v63 = vadd.f32 %v871_v46, %v866_v62 }
 0x32d   : > { %875 = vst [vmem:[%s1987_s4] sm:$0xff] %v873_v63 }
 0x332   : > { %v868_v1 = vpop.f32.mrf.mxu1 }
 0x333   : > { %v874_v2 = vadd.f32 %v872_v0, %v868_v1 }
 0x335   : > { %876 = vst [vmem:[%s1987_s4 + $0x8] sm:$0xff] %v874_v2 }
 0x336 PF: > { %s2171_s2 = sld [smem:[#allocation26_spill]]  ;;  %s893_s11 = sshll.u32 %s1987_s4, 4  ;;  %s894_s11 = int_to_ptr.vmem [resolvable:$true] %s893_s11 }
 0x337   : > { %s2172_s28 = sld [smem:[#allocation25_spill]]  ;;  %s878_s26 = scalar_lea.sflag [#allocation7], %s481_s5 }
 0x338   : > { %s2173_s20 = sld [smem:[#allocation27_spill]] }
 0x339   : > { %s2176_s17 = sld [smem:[#allocation43_spill]] }
 0x33d   : > { %s885_s24 = smul.u32 %s2172_s28, %s2171_s2 }
 0x33e   : > { %s1163_s13 = sshll.u32 %s2173_s20, 3 }
 0x33f   : > { %s1162_s22 = sshll.u32 %s885_s24, 1  ;;  %s2177_s18 = smov %s2176_s17 }
 0x340   : > { %s890_s21 = sadd.s32 %s1163_s13, %s1162_s22  ;;  %s1568_s28 = scalar_lea.hbm %s2177_s18, 128 }
 0x341   : > { %s1164_s3 = sshll.u32 %s890_s21, 3 }
 0x342   : > { %s892_s27 = scalar_lea.hbm %s2176_s17, %s1164_s3 }
 0x343   : > { %s895_s1 = sshll.u32 %s892_s27, 4  ;;  %s896_s1 = int_to_ptr.hbm [resolvable:$true] %s895_s1 }
 0x344   : > { %s1562_s15 = sshra.s32 %s896_s1, 4  ;;  %s1563_s15 = int_to_ptr.hbm [resolvable:$true] %s1562_s15 }
 0x345   : > { %s1564_s0 = scalar_lea.hbm %s1563_s15, 16  ;;  %p1569_p10 = scmp.lt.s32.totalorder %s1563_s15, %s2177_s18 }
 0x346   : > { %p1565_p5 = scmp.ne.s32.totalorder %s1563_s15, %s1564_s0  ;;  %p1570_p12 = scmp.lt.s32.totalorder %s1568_s28, %s1564_s0 }
 0x348   : > { %p1566_p6 = pnand %p1565_p5, %p1837_p7  ;;  %p1571_p0 = por %p1570_p12, %p1569_p10 }
 0x34a   : > { %p1567_p8 = pneg %p1566_p6 }
 0x34c   : > { %p1572_p2 = pnand %p1571_p0, %p1567_p8 }
 0x34e   : > { %1575 = shalt.err (!%p1572_p2)
}
 0x34f   : > { %s1709_s5 = smov 128   ;;  %s1710_s19 = smov 8  }
 0x350   : > { %1205 = dma.vmem_to_hbm [thread:$0]  (%p1837_p7), %s894_s11, 256, %s896_s1, %s878_s26, %s1709_s5, %s1709_s5, %s1710_s19  }
 0x351 PF: > { %s2178_s13 = sld [smem:[#allocation29_spill]] }
 0x352   : > { %s2179_s22 = sld [smem:[#allocation22_spill]] }
 0x357   : > { %p1238_p3 = scmp.ge.s32.totalorder %s2178_s13, 2 }
 0x358   : > { %s910_s3 = sand.u32 1, %s2179_s22  }
 0x359   : > { %p1228_p11 = pnand %p1238_p3, %p1842_p9  ;;  %s911_s25 = scalar_lea.sflag [#allocation7], %s910_s3 }
 0x35b   : > { %p1229_p13 = pneg %p1228_p11 }
 0x35d   : > { %1645 = dma.done.wait (%p1229_p13), %s911_s25, 256  }
 0x35e   : > { %1647 = vsyncadd (%p1229_p13), %s911_s25, 4294967040  ;;  %s29_s17 = sadd.s32 1, %s2178_s13   ;;  %s2182_s27 = sld [smem:[#allocation23_spill]] }
 0x35f   : > { %p2053_p1 = scmp.ge.s32.totalorder %s29_s17, 18   ;;  %s2183_s30 = sld [smem:[#allocation24_spill]] }
 0x360   : > { %s2184_s1 = sld [smem:[#allocation28_spill]]  ;;  %s2187_s28 = smov %s1658_s29 }
 0x361   : > { %s2185_s26 = sld [smem:[#allocation35_spill]]  ;;  %s2188_s29 = smov %s1904_s8 }
 0x362   : > { %s2186_s15 = sld [smem:[#allocation36_spill]]  ;;  %s2189_s9 = smov %s1670_s10 }
 0x363   : > { %s2190_s10 = smov %s1899_s12  ;;  %s2191_s11 = smov %s1686_s14 }
 0x364   : > { %s2193_s13 = smov %s1694_s16  ;;  %s2195_s16 = smov %s2205_s23 }
 0x365   :  { %28 = sbr.rel (!%p2053_p1) target bundleno = 22 (0x16), region = 145 }
 0x366   : > { %s2192_s12 = smov %s2184_s1 }
 0x367   : > { %s2194_s14 = smov %s2185_s26 }
 0x36a   :  { %917 = vsyncpa [#allocation6], 1 }
 0x36b   :  { %919 = vsyncpa [#allocation6 + $0x1], 1 }
 0x36c   :  { %920 = vsyncpa [#allocation9], 1 }
 0x36d   :  { %922 = vsyncpa [#allocation9 + $0x1], 1 }
 0x36e   :  { %923 = vsyncpa [#allocation12], 1 }
 0x36f   :  { %924 = vsyncpa [#allocation15], 1 }
 0x370   :  { %925 = vsyncpa [#allocation7], 1 }
 0x371   :  { %927 = vsyncpa [#allocation7 + $0x1], 1 }

</bundles_post_ra>
